<compile_context>
chip_gen: v6e
topology: v6e:2x2x1
jax: 0.10.0
libtpu: 0.0.40
codegen_flags: <defaults>
</compile_context>

<pallas_src>
import functools

import jax
import jax.numpy as jnp
import numpy as np
from jax.experimental import pallas as pl
from jax.experimental.pallas import tpu as pltpu

EPS = 1e-5


def _resblock_kernel(x_ref, w1_ref, w2_ref, gsum_ref, gamma_ref, beta_ref,
                     out_ref, *, width: int, resize: bool):
    # x_ref     : (N, H, W*Cin)      lane-folded NHWC input (unpadded)
    # w1_ref    : (3*W*Cin,  W*Cout) fused banded conv1 weights (kh stacked on K)
    # w2_ref    : (3*W*Cout, W*Cout) fused banded conv2 weights
    # gsum_ref  : (W*Cout, W*Cout)   block-tiled identity: per-channel sum,
    #                                broadcast back onto the folded lanes
    # gamma_ref, beta_ref : (1, W*Cout) lane-expanded BN affine params
    # out_ref   : (N, H, W*Cout)
    N, H, WCi = x_ref.shape
    WCo = out_ref.shape[-1]
    NH = N * H
    inv_m = 1.0 / float(NH * width)          # 1 / (N*H*W) samples per channel

    gamma_l = gamma_ref[...]                 # (1, W*Cout)
    beta_l = beta_ref[...]                   # (1, W*Cout)
    gsum = gsum_ref[...]                     # (W*Cout, W*Cout)

    def shifted_lhs(v):
        # v: (N, H, K) -> (NH, 3K): lane-blocks [v[h-1], v[h], v[h+1]]
        # (zero rows at the H boundary), matching the kh-stacked weights.
        K = v.shape[-1]
        zrow = jnp.zeros((N, 1, K), jnp.float32)
        up = jnp.concatenate([zrow, v[:, :H - 1, :]], axis=1)    # v[h-1]
        dn = jnp.concatenate([v[:, 1:, :], zrow], axis=1)        # v[h+1]
        return jnp.concatenate([up, v, dn], axis=-1).reshape(NH, 3 * K)

    def batchnorm(y):
        # Training-mode batch stats per channel (conv bias dropped upstream:
        # it cancels in (y - mean) under batch-stat BN).  One fused
        # sum / sum-of-squares pass + one (2,WCo)x(WCo,WCo) gather/broadcast dot.
        rowsum = jnp.sum(y, axis=0, keepdims=True)               # (1, WCo)
        rowsumsq = jnp.sum(y * y, axis=0, keepdims=True)         # (1, WCo)
        stats = jnp.concatenate([rowsum, rowsumsq], axis=0)      # (2, WCo)
        gstats = jnp.dot(stats, gsum, preferred_element_type=jnp.float32)
        mean = gstats[0:1, :] * inv_m
        var = gstats[1:2, :] * inv_m - mean * mean               # biased var
        scale = gamma_l * jax.lax.rsqrt(var + EPS)
        shift = beta_l - mean * scale
        return y * scale + shift                                 # lane-dense

    x = x_ref[...]                                               # (N, H, WCi)

    # ---- conv1 (single fused MXU dot) + BN + ReLU ----
    conv1 = jnp.dot(shifted_lhs(x), w1_ref[...],
                    preferred_element_type=jnp.float32)          # (NH, WCo)
    bn1 = batchnorm(conv1)
    relu1 = jnp.maximum(bn1, 0.0)

    # ---- conv2 (single fused MXU dot) + BN ----
    conv2 = jnp.dot(shifted_lhs(relu1.reshape(N, H, WCo)), w2_ref[...],
                    preferred_element_type=jnp.float32)          # (NH, WCo)
    bn2 = batchnorm(conv2)

    # ---- residual ----
    if resize:
        # PyTorch: x = BN(conv1(x)); with batch-stat (train-mode) BN this is
        # identical to bn1, so reuse it instead of recomputing.
        residual = bn1
    else:
        residual = x.reshape(NH, WCi)          # Cin == Cout, identity residual

    out_ref[...] = jnp.maximum(residual + bn2, 0.0).reshape(N, H, WCo)


# ----------------- parameter-only preprocessing (run ONCE at init) ----------
def _banded_conv_weights(w_oihw, W):
    """PyTorch conv weight (Co,Ci,kH,kW) -> fused (kH*W*Ci, W*Co) banded matmul
    weight.  The band structure encodes the kw taps and the width-boundary
    zero padding (pad=(kW-1)//2); the kh slabs are stacked along K so each
    conv becomes a single dot against a row-shift-stacked LHS."""
    w_hwio = np.transpose(np.asarray(w_oihw, np.float32), (2, 3, 1, 0))
    kH, kW, Ci, Co = w_hwio.shape
    pad = (kW - 1) // 2
    sel = np.zeros((W, kW, W), np.float32)          # sel[w_in, kw, w_out]
    for wo in range(W):
        for kw in range(kW):
            wi = wo + kw - pad
            if 0 <= wi < W:
                sel[wi, kw, wo] = 1.0
    banded = np.einsum('pkq,hkio->hpiqo', sel, w_hwio)   # (kH, W, Ci, W, Co)
    return jnp.asarray(banded.reshape(kH * W * Ci, W * Co))


def build_resblock_constants(params, W):
    """Hoisted per-parameter-set preprocessing; call once, reuse per forward.
    Conv biases are dropped (cancel under training-mode/batch-stat BN)."""
    w1, _b1, w2, _b2, gamma, beta = params
    Cout = w1.shape[0]
    w1_f = _banded_conv_weights(w1, W)                          # (3*W*Cin,  W*Cout)
    w2_f = _banded_conv_weights(w2, W)                          # (3*W*Cout, W*Cout)
    gsum = jnp.asarray(np.tile(np.eye(Cout, dtype=np.float32), (W, W)))
    gamma_l = jnp.tile(jnp.asarray(gamma, jnp.float32), W).reshape(1, W * Cout)
    beta_l = jnp.tile(jnp.asarray(beta, jnp.float32), W).reshape(1, W * Cout)
    return (w1_f, w2_f, gsum, gamma_l, beta_l)


# ----------------------------- forward wrappers ------------------------------
def resblock_forward_folded(x_folded, consts, *, width: int, resize: bool):
    """x_folded: (N, H, W*Cin) lane-folded NHWC f32.  Returns (N, H, W*Cout)."""
    w1_f, w2_f, gsum, gamma_l, beta_l = consts
    N, H, _ = x_folded.shape
    WCo = gsum.shape[0]
    vmem = pl.BlockSpec(memory_space=pltpu.MemorySpace.VMEM)
    kernel = functools.partial(_resblock_kernel, width=width, resize=resize)
    return pl.pallas_call(
        kernel,
        out_shape=jax.ShapeDtypeStruct((N, H, WCo), jnp.float32),
        in_specs=[vmem] * 6,
        out_specs=vmem,
    )(x_folded, w1_f, w2_f, gsum, gamma_l, beta_l)


def resblock_forward(x_nchw, consts, *, resize: bool):
    """NCHW interface matching the PyTorch module.

    NOTE: the NCHW<->NHWC transposes exist only to match that interface; in a
    full network keep the lane-folded layout across blocks and call
    resblock_forward_folded directly (the transposes cost more than the kernel
    at these shapes)."""
    N, Cin, H, W = x_nchw.shape
    x_folded = jnp.transpose(x_nchw, (0, 2, 3, 1)).astype(jnp.float32)
    x_folded = x_folded.reshape(N, H, W * Cin)
    out = resblock_forward_folded(x_folded, consts, width=W, resize=resize)
    Cout = out.shape[-1] // W
    return jnp.transpose(out.reshape(N, H, W, Cout), (0, 3, 1, 2))


# ---------------- pure-JAX reference (for correctness check) ----------------
def _conv_ref(x_nhwc, w_oihw, b):
    out = jax.lax.conv_general_dilated(
        x_nhwc, jnp.transpose(w_oihw, (2, 3, 1, 0)),
        window_strides=(1, 1), padding=((1, 1), (1, 1)),
        dimension_numbers=("NHWC", "HWIO", "NHWC"))
    return out + b


def _bn_ref(y, gamma, beta):
    mean = jnp.mean(y, axis=(0, 1, 2), keepdims=True)
    var = jnp.mean((y - mean) ** 2, axis=(0, 1, 2), keepdims=True)
    return (y - mean) * jax.lax.rsqrt(var + EPS) * gamma + beta


def resblock_ref(x_nchw, params, *, resize: bool):
    w1, b1, w2, b2, gamma, beta = params
    x = jnp.transpose(x_nchw, (0, 2, 3, 1)).astype(jnp.float32)
    c1 = _bn_ref(_conv_ref(x, w1, b1), gamma, beta)
    r1 = jnp.maximum(c1, 0.0)
    c2 = _bn_ref(_conv_ref(r1, w2, b2), gamma, beta)
    res = c1 if resize else x
    out = jnp.maximum(res + c2, 0.0)
    return jnp.transpose(out, (0, 3, 1, 2))


if __name__ == "__main__":
    key = jax.random.PRNGKey(0)

    def make_params(k, c_in, c_out):
        k_w1, k_b1, k_w2, k_b2, k_g, k_be = jax.random.split(k, 6)
        w1 = 0.1 * jax.random.normal(k_w1, (c_out, c_in, 3, 3), jnp.float32)
        b1 = 0.1 * jax.random.normal(k_b1, (c_out,), jnp.float32)
        w2 = 0.1 * jax.random.normal(k_w2, (c_out, c_out, 3, 3), jnp.float32)
        b2 = 0.1 * jax.random.normal(k_b2, (c_out,), jnp.float32)
        gamma = 1.0 + 0.1 * jax.random.normal(k_g, (c_out,), jnp.float32)
        beta = 0.1 * jax.random.normal(k_be, (c_out,), jnp.float32)
        return (w1, b1, w2, b2, gamma, beta)

    N, H, W = 2, 16, 16
    k_x1, k_p1, k_x2, k_p2 = jax.random.split(key, 4)

    # Case 1: ResBlock(c_in=4, c_out=8, k=3, s=1, p=1, 'encode') -> resize=True
    x1 = jax.random.normal(k_x1, (N, 4, H, W), jnp.float32)
    p1 = make_params(k_p1, 4, 8)
    c1 = build_resblock_constants(p1, W)             # hoisted, once per params
    out1 = jax.block_until_ready(resblock_forward(x1, c1, resize=True))
    ref1 = jax.block_until_ready(resblock_ref(x1, p1, resize=True))
    assert out1.shape == (N, 8, H, W)
    assert jnp.allclose(out1, ref1, rtol=2e-4, atol=2e-4), \
        f"resize=True max abs err {jnp.max(jnp.abs(out1 - ref1))}"

    # Case 2: c_in == c_out == 8 -> resize=False (identity residual path)
    x2 = jax.random.normal(k_x2, (N, 8, H, W), jnp.float32)
    p2 = make_params(k_p2, 8, 8)
    c2 = build_resblock_constants(p2, W)
    out2 = jax.block_until_ready(resblock_forward(x2, c2, resize=False))
    ref2 = jax.block_until_ready(resblock_ref(x2, p2, resize=False))
    assert jnp.allclose(out2, ref2, rtol=2e-4, atol=2e-4), \
        f"resize=False max abs err {jnp.max(jnp.abs(out2 - ref2))}"

    print("KERNEL_OK")
</pallas_src>

<mosaic_0001>
module attributes {stable_mosaic.version = 11 : i64} {
  func.func @_resblock_kernel(%arg0: memref<2x16x64xf32, #tpu.memory_space<vmem>>, %arg1: memref<192x128xf32, #tpu.memory_space<vmem>>, %arg2: memref<384x128xf32, #tpu.memory_space<vmem>>, %arg3: memref<128x128xf32, #tpu.memory_space<vmem>>, %arg4: memref<1x128xf32, #tpu.memory_space<vmem>>, %arg5: memref<1x128xf32, #tpu.memory_space<vmem>>, %arg6: memref<2x16x128xf32, #tpu.memory_space<vmem>>) attributes {dimension_semantics = [], scalar_prefetch = 0 : i64, scratch_operands = 0 : i64, tpu.core_type = #tpu.core_type<tc>} {
    %c0 = arith.constant 0 : index
    %c0_0 = arith.constant 0 : index
    %0 = vector.load %arg4[%c0, %c0_0] : memref<1x128xf32, #tpu.memory_space<vmem>>, vector<1x128xf32>
    %c0_1 = arith.constant 0 : index
    %c0_2 = arith.constant 0 : index
    %1 = vector.load %arg5[%c0_1, %c0_2] : memref<1x128xf32, #tpu.memory_space<vmem>>, vector<1x128xf32>
    %c0_3 = arith.constant 0 : index
    %c0_4 = arith.constant 0 : index
    %2 = vector.load %arg3[%c0_3, %c0_4] : memref<128x128xf32, #tpu.memory_space<vmem>>, vector<128x128xf32>
    %c0_5 = arith.constant 0 : index
    %c0_6 = arith.constant 0 : index
    %c0_7 = arith.constant 0 : index
    %3 = vector.load %arg0[%c0_5, %c0_6, %c0_7] : memref<2x16x64xf32, #tpu.memory_space<vmem>>, vector<2x16x64xf32>
    %cst = arith.constant 0.000000e+00 : f32
    %4 = vector.broadcast %cst : f32 to vector<2x1x64xf32>
    %5 = vector.extract_strided_slice %3 {offsets = [0, 0, 0], sizes = [2, 15, 64], strides = [1, 1, 1]} : vector<2x16x64xf32> to vector<2x15x64xf32>
    %6 = tpu.concatenate %4, %5 in 1 : vector<2x1x64xf32>, vector<2x15x64xf32> -> vector<2x16x64xf32>
    %7 = vector.extract_strided_slice %3 {offsets = [0, 1, 0], sizes = [2, 15, 64], strides = [1, 1, 1]} : vector<2x16x64xf32> to vector<2x15x64xf32>
    %8 = tpu.concatenate %7, %4 in 1 : vector<2x15x64xf32>, vector<2x1x64xf32> -> vector<2x16x64xf32>
    %9 = tpu.concatenate %6, %3, %8 in 2 : vector<2x16x64xf32>, vector<2x16x64xf32>, vector<2x16x64xf32> -> vector<2x16x192xf32>
    %10 = vector.shape_cast %9 : vector<2x16x192xf32> to vector<32x192xf32>
    %c0_8 = arith.constant 0 : index
    %c0_9 = arith.constant 0 : index
    %11 = vector.load %arg1[%c0_8, %c0_9] : memref<192x128xf32, #tpu.memory_space<vmem>>, vector<192x128xf32>
    %cst_10 = arith.constant dense<0.000000e+00> : vector<32x128xf32>
    %12 = tpu.matmul %10, %11, %cst_10 {dimension_numbers = #tpu.dot_dimension_numbers<[1], [0], [0], [1], [0, 0, 1, 1], [], []>} : vector<32x192xf32>, vector<192x128xf32>, vector<32x128xf32> -> vector<32x128xf32>
    %cst_11 = arith.constant dense<0.000000e+00> : vector<128xf32>
    %13 = vector.multi_reduction <add>, %12, %cst_11 [0] : vector<32x128xf32> to vector<128xf32>
    %14 = vector.shape_cast %13 : vector<128xf32> to vector<1x128xf32>
    %15 = arith.mulf %12, %12 : vector<32x128xf32>
    %cst_12 = arith.constant dense<0.000000e+00> : vector<128xf32>
    %16 = vector.multi_reduction <add>, %15, %cst_12 [0] : vector<32x128xf32> to vector<128xf32>
    %17 = vector.shape_cast %16 : vector<128xf32> to vector<1x128xf32>
    %18 = tpu.concatenate %14, %17 in 0 : vector<1x128xf32>, vector<1x128xf32> -> vector<2x128xf32>
    %cst_13 = arith.constant dense<0.000000e+00> : vector<2x128xf32>
    %19 = tpu.matmul %18, %2, %cst_13 {dimension_numbers = #tpu.dot_dimension_numbers<[1], [0], [0], [1], [0, 0, 1, 1], [], []>} : vector<2x128xf32>, vector<128x128xf32>, vector<2x128xf32> -> vector<2x128xf32>
    %20 = vector.extract_strided_slice %19 {offsets = [0, 0], sizes = [1, 128], strides = [1, 1]} : vector<2x128xf32> to vector<1x128xf32>
    %cst_14 = arith.constant 0.001953125 : f32
    %21 = vector.broadcast %cst_14 : f32 to vector<1x128xf32>
    %22 = arith.mulf %20, %21 : vector<1x128xf32>
    %23 = vector.extract_strided_slice %19 {offsets = [1, 0], sizes = [1, 128], strides = [1, 1]} : vector<2x128xf32> to vector<1x128xf32>
    %cst_15 = arith.constant 0.001953125 : f32
    %24 = vector.broadcast %cst_15 : f32 to vector<1x128xf32>
    %25 = arith.mulf %23, %24 : vector<1x128xf32>
    %26 = arith.mulf %22, %22 : vector<1x128xf32>
    %27 = arith.subf %25, %26 : vector<1x128xf32>
    %cst_16 = arith.constant 9.99999974E-6 : f32
    %28 = vector.broadcast %cst_16 : f32 to vector<1x128xf32>
    %29 = arith.addf %27, %28 : vector<1x128xf32>
    %30 = math.rsqrt %29 : vector<1x128xf32>
    %31 = arith.mulf %0, %30 : vector<1x128xf32>
    %32 = arith.mulf %22, %31 : vector<1x128xf32>
    %33 = arith.subf %1, %32 : vector<1x128xf32>
    %34 = vector.broadcast %31 : vector<1x128xf32> to vector<32x128xf32>
    %35 = arith.mulf %12, %34 : vector<32x128xf32>
    %36 = vector.broadcast %33 : vector<1x128xf32> to vector<32x128xf32>
    %37 = arith.addf %35, %36 : vector<32x128xf32>
    %cst_17 = arith.constant 0.000000e+00 : f32
    %38 = vector.broadcast %cst_17 : f32 to vector<32x128xf32>
    %39 = arith.maximumf %37, %38 : vector<32x128xf32>
    %40 = vector.shape_cast %39 : vector<32x128xf32> to vector<2x16x128xf32>
    %cst_18 = arith.constant 0.000000e+00 : f32
    %41 = vector.broadcast %cst_18 : f32 to vector<2x1x128xf32>
    %42 = vector.extract_strided_slice %40 {offsets = [0, 0, 0], sizes = [2, 15, 128], strides = [1, 1, 1]} : vector<2x16x128xf32> to vector<2x15x128xf32>
    %43 = tpu.concatenate %41, %42 in 1 : vector<2x1x128xf32>, vector<2x15x128xf32> -> vector<2x16x128xf32>
    %44 = vector.extract_strided_slice %40 {offsets = [0, 1, 0], sizes = [2, 15, 128], strides = [1, 1, 1]} : vector<2x16x128xf32> to vector<2x15x128xf32>
    %45 = tpu.concatenate %44, %41 in 1 : vector<2x15x128xf32>, vector<2x1x128xf32> -> vector<2x16x128xf32>
    %46 = tpu.concatenate %43, %40, %45 in 2 : vector<2x16x128xf32>, vector<2x16x128xf32>, vector<2x16x128xf32> -> vector<2x16x384xf32>
    %47 = vector.shape_cast %46 : vector<2x16x384xf32> to vector<32x384xf32>
    %c0_19 = arith.constant 0 : index
    %c0_20 = arith.constant 0 : index
    %48 = vector.load %arg2[%c0_19, %c0_20] : memref<384x128xf32, #tpu.memory_space<vmem>>, vector<384x128xf32>
    %cst_21 = arith.constant dense<0.000000e+00> : vector<32x128xf32>
    %49 = tpu.matmul %47, %48, %cst_21 {dimension_numbers = #tpu.dot_dimension_numbers<[1], [0], [0], [1], [0, 0, 1, 1], [], []>} : vector<32x384xf32>, vector<384x128xf32>, vector<32x128xf32> -> vector<32x128xf32>
    %cst_22 = arith.constant dense<0.000000e+00> : vector<128xf32>
    %50 = vector.multi_reduction <add>, %49, %cst_22 [0] : vector<32x128xf32> to vector<128xf32>
    %51 = vector.shape_cast %50 : vector<128xf32> to vector<1x128xf32>
    %52 = arith.mulf %49, %49 : vector<32x128xf32>
    %cst_23 = arith.constant dense<0.000000e+00> : vector<128xf32>
    %53 = vector.multi_reduction <add>, %52, %cst_23 [0] : vector<32x128xf32> to vector<128xf32>
    %54 = vector.shape_cast %53 : vector<128xf32> to vector<1x128xf32>
    %55 = tpu.concatenate %51, %54 in 0 : vector<1x128xf32>, vector<1x128xf32> -> vector<2x128xf32>
    %cst_24 = arith.constant dense<0.000000e+00> : vector<2x128xf32>
    %56 = tpu.matmul %55, %2, %cst_24 {dimension_numbers = #tpu.dot_dimension_numbers<[1], [0], [0], [1], [0, 0, 1, 1], [], []>} : vector<2x128xf32>, vector<128x128xf32>, vector<2x128xf32> -> vector<2x128xf32>
    %57 = vector.extract_strided_slice %56 {offsets = [0, 0], sizes = [1, 128], strides = [1, 1]} : vector<2x128xf32> to vector<1x128xf32>
    %cst_25 = arith.constant 0.001953125 : f32
    %58 = vector.broadcast %cst_25 : f32 to vector<1x128xf32>
    %59 = arith.mulf %57, %58 : vector<1x128xf32>
    %60 = vector.extract_strided_slice %56 {offsets = [1, 0], sizes = [1, 128], strides = [1, 1]} : vector<2x128xf32> to vector<1x128xf32>
    %cst_26 = arith.constant 0.001953125 : f32
    %61 = vector.broadcast %cst_26 : f32 to vector<1x128xf32>
    %62 = arith.mulf %60, %61 : vector<1x128xf32>
    %63 = arith.mulf %59, %59 : vector<1x128xf32>
    %64 = arith.subf %62, %63 : vector<1x128xf32>
    %cst_27 = arith.constant 9.99999974E-6 : f32
    %65 = vector.broadcast %cst_27 : f32 to vector<1x128xf32>
    %66 = arith.addf %64, %65 : vector<1x128xf32>
    %67 = math.rsqrt %66 : vector<1x128xf32>
    %68 = arith.mulf %0, %67 : vector<1x128xf32>
    %69 = arith.mulf %59, %68 : vector<1x128xf32>
    %70 = arith.subf %1, %69 : vector<1x128xf32>
    %71 = vector.broadcast %68 : vector<1x128xf32> to vector<32x128xf32>
    %72 = arith.mulf %49, %71 : vector<32x128xf32>
    %73 = vector.broadcast %70 : vector<1x128xf32> to vector<32x128xf32>
    %74 = arith.addf %72, %73 : vector<32x128xf32>
    %75 = arith.addf %37, %74 : vector<32x128xf32>
    %cst_28 = arith.constant 0.000000e+00 : f32
    %76 = vector.broadcast %cst_28 : f32 to vector<32x128xf32>
    %77 = arith.maximumf %75, %76 : vector<32x128xf32>
    %78 = vector.shape_cast %77 : vector<32x128xf32> to vector<2x16x128xf32>
    %c0_29 = arith.constant 0 : index
    %c0_30 = arith.constant 0 : index
    %c0_31 = arith.constant 0 : index
    %79 = vector.load %arg6[%c0_29, %c0_30, %c0_31] : memref<2x16x128xf32, #tpu.memory_space<vmem>>, vector<2x16x128xf32>
    tpu.vector_store %arg6[%c0_29, %c0_30, %c0_31], %78 {strides = array<i32>} : memref<2x16x128xf32, #tpu.memory_space<vmem>>, vector<2x16x128xf32>,
    return
  }
}

</mosaic_0001>

<bundles_post_ra>
// kernel: tpu_custom_call.1
= control target key start
LH: loop header
LB: loop body
LE: loop exit
PB: predicated region body
PF: predicated region fallthrough
CT: control target
= control target key end

     0   :  { %11 = vsyncpa [#allocation3], 0  ;;  %s1511_s0 = inlined_call_operand.hbm [shape: f32[2,16,64], index: 0, kind: input, shape index: {}]   ;;  %s1512_s1 = inlined_call_operand.hbm [shape: f32[192,128], index: 1, kind: input, shape index: {}]   ;;  %s1513_s2 = inlined_call_operand.hbm [shape: f32[384,128], index: 2, kind: input, shape index: {}]   ;;  %s1514_s3 = inlined_call_operand.hbm [shape: f32[128,128], index: 3, kind: input, shape index: {}]   ;;  %s1515_s4 = inlined_call_operand.vmem [shape: f32[1,128], index: 4, kind: input, shape index: {}]   ;;  %s1516_s5 = inlined_call_operand.vmem [shape: f32[1,128], index: 5, kind: input, shape index: {}]   ;;  %s1517_s6 = inlined_call_operand.hbm [shape: f32[2,16,128], index: 6, kind: output, shape index: {}]  }
   0x1   :  { %12 = vsyncpa [#allocation6], 0 }
   0x2   :  { %13 = vsyncpa [#allocation9], 0 }
   0x3   :  { %14 = vsyncpa [#allocation4], 0  ;;  %s1167_s21 = smov [#allocation5]   ;;  %s1168_s23 = smov [#allocation2]  }
   0x4   :  { %s32_s22 = sshll.u32 %s1167_s21, 4  ;;  %s20_s24 = sshll.u32 %s1168_s23, 4  ;;  %s33_s22 = int_to_ptr.vmem [resolvable:$true] %s32_s22  ;;  %s21_s24 = int_to_ptr.vmem [resolvable:$true] %s20_s24 }
   0x5   :  { %s1067_s25 = scalar_lea.vmem %s33_s22, 3072  ;;  %p1072_p1 = scmp.lt.s32.totalorder %s33_s22, %s33_s22 }
   0x6   :  { %p1068_p0 = scmp.ne.s32.totalorder %s33_s22, %s1067_s25  ;;  %p1073_p2 = scmp.lt.s32.totalorder %s1067_s25, %s1067_s25 }
   0x8   :  { %p1074_p3 = por %p1073_p2, %p1072_p1 }
   0xa   :  { %p1075_p4 = pnand %p1074_p3, %p1068_p0 }
   0xc   :  { %1078 = shalt.err (!%p1075_p4)
}
   0xd   :  { %s1169_s26 = smov 128   ;;  %s1170_s27 = smov 8  }
   0xe   :  { %38 = dma.hbm_to_vmem [thread:$0]  %s1512_s1, 3072, %s33_s22, [#allocation6], %s1169_s26, %s1169_s26, %s1170_s27  }
   0xf   :  { %s1087_s30 = scalar_lea.vmem %s21_s24, 512  ;;  %p1092_p6 = scmp.lt.s32.totalorder %s21_s24, %s21_s24 }
  0x10   :  { %p1088_p5 = scmp.ne.s32.totalorder %s21_s24, %s1087_s30  ;;  %p1093_p7 = scmp.lt.s32.totalorder %s1087_s30, %s1087_s30 }
  0x12   :  { %p1094_p8 = por %p1093_p7, %p1092_p6 }
  0x14   :  { %p1095_p9 = pnand %p1094_p8, %p1088_p5 }
  0x16   :  { %1098 = shalt.err (!%p1095_p9)
}
  0x17   :  { %26 = dma.hbm_to_vmem [thread:$0]  %s1511_s0, 512, %s21_s24, [#allocation3], %s1169_s26, %s1169_s26, %s1170_s27  }
  0x18   :  { %s1171_s9 = smov [#allocation7]   ;;  %s1172_s11 = smov [#allocation8]  }
  0x19   :  { %s44_s10 = sshll.u32 %s1171_s9, 4  ;;  %s56_s12 = sshll.u32 %s1172_s11, 4  ;;  %s45_s10 = int_to_ptr.vmem [resolvable:$true] %s44_s10  ;;  %s57_s12 = int_to_ptr.vmem [resolvable:$true] %s56_s12 }
  0x1a   :  { %s1107_s1 = scalar_lea.vmem %s45_s10, 6144  ;;  %p1112_p11 = scmp.lt.s32.totalorder %s45_s10, %s45_s10 }
  0x1b   :  { %p1108_p10 = scmp.ne.s32.totalorder %s45_s10, %s1107_s1  ;;  %p1113_p12 = scmp.lt.s32.totalorder %s1107_s1, %s1107_s1 }
  0x1d   :  { %p1114_p13 = por %p1113_p12, %p1112_p11 }
  0x1f   :  { %p1115_p0 = pnand %p1114_p13, %p1108_p10 }
  0x21   :  { %1118 = shalt.err (!%p1115_p0)
}
  0x22   :  { %50 = dma.hbm_to_vmem [thread:$0]  %s1513_s2, 6144, %s45_s10, [#allocation6], %s1169_s26, %s1169_s26, %s1170_s27  }
  0x23   :  { %s1127_s0 = scalar_lea.vmem %s57_s12, 2048  ;;  %p1132_p2 = scmp.lt.s32.totalorder %s57_s12, %s57_s12 }
  0x24   :  { %p1128_p1 = scmp.ne.s32.totalorder %s57_s12, %s1127_s0  ;;  %p1133_p3 = scmp.lt.s32.totalorder %s1127_s0, %s1127_s0 }
  0x26   :  { %p1134_p4 = por %p1133_p3, %p1132_p2 }
  0x28   :  { %p1135_p5 = pnand %p1134_p4, %p1128_p1 }
  0x2a   :  { %1138 = shalt.err (!%p1135_p5)
}
  0x2b   :  { %62 = dma.hbm_to_vmem [thread:$0]  %s1514_s3, 2048, %s57_s12, [#allocation9], %s1169_s26, %s1169_s26, %s1170_s27  }
  0x2c   :  { %1159 = dma.done.wait [#allocation3], 512  }
  0x2d   :  { %1160 = vsyncadd [#allocation3], 4294966784 }
  0x2e   :  { %1161 = dma.done.wait [#allocation6], 9216  }
  0x2f   :  { %1162 = vsyncadd [#allocation6], 4294958080 }
  0x30   :  { %1163 = dma.done.wait [#allocation9], 2048  }
  0x31   :  { %1164 = vsyncadd [#allocation9], 4294965248  ;;  %v1173_v0 = vmov 0.0   ;;  %v1239_v1 = vld [vmem:[#allocation2] sm:$0xff]  ;;  %v1241_v2 = vld [vmem:[#allocation2 + $0x8] sm:$0xff]  ;;  %vm118_vm0 = vcmask 1046528  }
  0x32   :  { %180 = vmatprep.subr.mxu0 %v1173_v0  ;;  %936 = vmatprep.subr.mxu1 %v1173_v0  ;;  %v1243_v3 = vld [vmem:[#allocation2 + $0x10] sm:$0xff]  ;;  %vm141_vm1 = vcmask 523264   ;;  %vm105_vm2 = vcmask 1040384   ;;  %s1174_s2 = smov 64   ;;  %v106_v4 = vrot.slane %v1239_v1, 7  ;;  %v119_v5 = vrot.slane %v1239_v1, 1 }
  0x33   :  { %129 = vrot.lane.b32.xlu0 %v1239_v1, %s1174_s2  ;;  %v107_v6 = vrot.slane %v1241_v2, 7  ;;  %v120_v7 = vrot.slane %v1241_v2, 1  ;;  %133 = vrot.lane.b32.xlu1 %v1243_v3, %s1174_s2  ;;  %v1251_v8 = vld [vmem:[#allocation2 + $0x18] sm:$0xff]  ;;  %v109_v10 = vrot.slane %v1243_v3, 7  ;;  %v122_v11 = vrot.slane %v1243_v3, 1  ;;  %v160_v14 = vld [vmem:[#allocation5 + $0x70] sm:$0xff]  ;;  %vm1447_vm4 = vmneg %vm105_vm2 }
  0x34   :  { %v161_v9 = vld [vmem:[#allocation5 + $0x78] sm:$0xff]  ;;  %v110_v12 = vrot.slane %v1251_v8, 7  ;;  %v123_v13 = vrot.slane %v1251_v8, 1  ;;  %v159_v17 = vld [vmem:[#allocation5 + $0x68] sm:$0xff]  ;;  %v158_v20 = vld [vmem:[#allocation5 + $0x60] sm:$0xff]  ;;  %v116_v42 = vsel %vm105_vm2, 0.0, %v106_v4 }
  0x35   :  { %181 = vmatpush1.msra.mxu0 %v161_v9  ;;  %v121_v15 = vsel %vm118_vm0, %v119_v5, %v120_v7  ;;  %v1264_v16 = vsel %vm105_vm2, %v106_v4, %v107_v6  ;;  %v157_v21 = vld [vmem:[#allocation5 + $0x58] sm:$0xff]  ;;  %v156_v22 = vld [vmem:[#allocation5 + $0x50] sm:$0xff]  ;;  %v155_v24 = vld [vmem:[#allocation5 + $0x48] sm:$0xff]  ;;  %v127_v44 = vsel %vm118_vm0, %v120_v7, 0.0  ;;  %v117_v48 = vsel %vm105_vm2, 0.0, %v109_v10 }
  0x36   :  { %182 = vmatprep.subr.mxu0 %v1173_v0  ;;  %828 = vmatprep.mubr.msk.f32.mxu0 %vm141_vm1, %v121_v15  ;;  %v1270_v18 = vsel %vm118_vm0, %v122_v11, %v123_v13  ;;  %v1275_v19 = vsel %vm105_vm2, %v109_v10, %v110_v12  ;;  %v1282_v23 = vld [vmem:[#allocation8 + $0x78] sm:$0xff]  ;;  %v154_v25 = vld [vmem:[#allocation5 + $0x40] sm:$0xff]  ;;  %v152_v27 = vld [vmem:[#allocation5 + $0x30] sm:$0xff]  ;;  %v128_v52 = vsel %vm118_vm0, %v123_v13, 0.0  ;;  %vm1175_vm3 = vmmov 0  }
  0x37   :  { %183 = vmatpush1.msra.mxu0 %v160_v14  ;;  %131 = vrot.lane.b32.xlu0 %v1241_v2, %s1174_s2  ;;  %v153_v26 = vld [vmem:[#allocation5 + $0x38] sm:$0xff]  ;;  %v151_v28 = vld [vmem:[#allocation5 + $0x28] sm:$0xff]  ;;  %v150_v29 = vld [vmem:[#allocation5 + $0x20] sm:$0xff] }
  0x38   :  { %135 = vrot.lane.b32.xlu1 %v1251_v8, %s1174_s2  ;;  %184 = vmatprep.subr.mxu0 %v1173_v0  ;;  %v149_v30 = vld [vmem:[#allocation5 + $0x18] sm:$0xff]  ;;  %v148_v31 = vld [vmem:[#allocation5 + $0x10] sm:$0xff]  ;;  %v147_v32 = vld [vmem:[#allocation5 + $0x8] sm:$0xff] }
  0x39   :  { %185 = vmatpush1.msra.mxu0 %v159_v17  ;;  %937 = vmatpush3.msra.mxu1 %v1282_v23  ;;  %v146_v33 = vld [vmem:[#allocation5] sm:$0xff]  ;;  %v169_v34 = vld [vmem:[#allocation5 + $0xb8] sm:$0xff]  ;;  %v168_v35 = vld [vmem:[#allocation5 + $0xb0] sm:$0xff] }
  0x3a   :  { %186 = vmatprep.subr.mxu0 %v1173_v0  ;;  %938 = vmatprep.subr.mxu1 %v1173_v0  ;;  %v167_v36 = vld [vmem:[#allocation5 + $0xa8] sm:$0xff]  ;;  %v166_v37 = vld [vmem:[#allocation5 + $0xa0] sm:$0xff]  ;;  %v165_v38 = vld [vmem:[#allocation5 + $0x98] sm:$0xff] }
  0x3b   :  { %187 = vmatpush1.msra.mxu0 %v158_v20  ;;  %v164_v39 = vld [vmem:[#allocation5 + $0x90] sm:$0xff]  ;;  %v163_v40 = vld [vmem:[#allocation5 + $0x88] sm:$0xff]  ;;  %v162_v41 = vld [vmem:[#allocation5 + $0x80] sm:$0xff]  ;;  %968 = vmatprep.mubr.msk.f32.mxu1 %vm1175_vm3, %v1173_v0 }
  0x3c   :  { %188 = vmatprep.subr.mxu0 %v1173_v0  ;;  %v1327_v54 = vld [vmem:[#allocation8 + $0x70] sm:$0xff]  ;;  %v1331_v55 = vld [vmem:[#allocation8 + $0x68] sm:$0xff]  ;;  %v1335_v56 = vld [vmem:[#allocation8 + $0x60] sm:$0xff] }
  0x3d   :  { %189 = vmatpush1.msra.mxu0 %v157_v21  ;;  %939 = vmatpush3.msra.mxu1 %v1327_v54  ;;  %v1339_v57 = vld [vmem:[#allocation8 + $0x58] sm:$0xff]  ;;  %v1343_v58 = vld [vmem:[#allocation8 + $0x50] sm:$0xff]  ;;  %v1347_v59 = vld [vmem:[#allocation8 + $0x48] sm:$0xff] }
  0x3e   :  { %190 = vmatprep.subr.mxu0 %v1173_v0  ;;  %940 = vmatprep.subr.mxu1 %v1173_v0  ;;  %v1351_v60 = vld [vmem:[#allocation8 + $0x40] sm:$0xff]  ;;  %v1355_v61 = vld [vmem:[#allocation8 + $0x38] sm:$0xff]  ;;  %v1359_v62 = vld [vmem:[#allocation8 + $0x30] sm:$0xff] }
  0x3f   :  { %191 = vmatpush1.msra.mxu0 %v156_v22  ;;  %941 = vmatpush3.msra.mxu1 %v1331_v55  ;;  %v1363_v63 = vld [vmem:[#allocation8 + $0x28] sm:$0xff]  ;;  %v1367_v1 = vld [vmem:[#allocation8 + $0x20] sm:$0xff]  ;;  %v1370_v2 = vld [vmem:[#allocation8 + $0x18] sm:$0xff] }
  0x40   :  { %192 = vmatprep.subr.mxu0 %v1173_v0  ;;  %942 = vmatprep.subr.mxu1 %v1173_v0  ;;  %v1373_v3 = vld [vmem:[#allocation8 + $0x10] sm:$0xff]  ;;  %v1379_v4 = vld [vmem:[#allocation8 + $0x8] sm:$0xff]  ;;  %v1383_v5 = vld [vmem:[#allocation8] sm:$0xff] }
  0x41   :  { %193 = vmatpush1.msra.mxu0 %v155_v24  ;;  %943 = vmatpush3.msra.mxu1 %v1335_v56 }
  0x42   :  { %194 = vmatprep.subr.mxu0 %v1173_v0  ;;  %944 = vmatprep.subr.mxu1 %v1173_v0 }
  0x43   :  { %195 = vmatpush1.msra.mxu0 %v154_v25  ;;  %945 = vmatpush3.msra.mxu1 %v1339_v57 }
  0x44   :  { %196 = vmatprep.subr.mxu0 %v1173_v0  ;;  %946 = vmatprep.subr.mxu1 %v1173_v0 }
  0x45   :  { %197 = vmatpush1.msra.mxu0 %v153_v26  ;;  %947 = vmatpush3.msra.mxu1 %v1343_v58 }
  0x46   :  { %198 = vmatprep.subr.mxu0 %v1173_v0  ;;  %948 = vmatprep.subr.mxu1 %v1173_v0 }
  0x47   :  { %199 = vmatpush1.msra.mxu0 %v152_v27  ;;  %949 = vmatpush3.msra.mxu1 %v1347_v59 }
  0x48   :  { %200 = vmatprep.subr.mxu0 %v1173_v0  ;;  %950 = vmatprep.subr.mxu1 %v1173_v0 }
  0x49   :  { %201 = vmatpush1.msra.mxu0 %v151_v28  ;;  %951 = vmatpush3.msra.mxu1 %v1351_v60 }
  0x4a   :  { %202 = vmatprep.subr.mxu0 %v1173_v0  ;;  %952 = vmatprep.subr.mxu1 %v1173_v0 }
  0x4b   :  { %203 = vmatpush1.msra.mxu0 %v150_v29  ;;  %953 = vmatpush3.msra.mxu1 %v1355_v61 }
  0x4c   :  { %204 = vmatprep.subr.mxu0 %v1173_v0  ;;  %954 = vmatprep.subr.mxu1 %v1173_v0 }
  0x4d   :  { %205 = vmatpush1.msra.mxu0 %v149_v30  ;;  %955 = vmatpush3.msra.mxu1 %v1359_v62 }
  0x4e   :  { %206 = vmatprep.subr.mxu0 %v1173_v0  ;;  %956 = vmatprep.subr.mxu1 %v1173_v0 }
  0x4f   :  { %207 = vmatpush1.msra.mxu0 %v148_v31  ;;  %957 = vmatpush3.msra.mxu1 %v1363_v63 }
  0x50   :  { %208 = vmatprep.subr.mxu0 %v1173_v0  ;;  %958 = vmatprep.subr.mxu1 %v1173_v0 }
  0x51   :  { %209 = vmatpush1.msra.mxu0 %v147_v32  ;;  %959 = vmatpush3.msra.mxu1 %v1367_v1 }
  0x52   :  { %210 = vmatprep.subr.mxu0 %v1173_v0  ;;  %960 = vmatprep.subr.mxu1 %v1173_v0 }
  0x53   :  { %211 = vmatpush1.msra.mxu0 %v146_v33  ;;  %961 = vmatpush3.msra.mxu1 %v1370_v2 }
  0x54   :  { %228 = vmatprep.subr.mxu0 %v1173_v0  ;;  %962 = vmatprep.subr.mxu1 %v1173_v0 }
  0x55   :  { %229 = vmatpush2.msra.mxu0 %v169_v34  ;;  %963 = vmatpush3.msra.mxu1 %v1373_v3 }
  0x56   :  { %230 = vmatprep.subr.mxu0 %v1173_v0  ;;  %964 = vmatprep.subr.mxu1 %v1173_v0 }
  0x57   :  { %231 = vmatpush2.msra.mxu0 %v168_v35  ;;  %965 = vmatpush3.msra.mxu1 %v1379_v4 }
  0x58   :  { %232 = vmatprep.subr.mxu0 %v1173_v0  ;;  %966 = vmatprep.subr.mxu1 %v1173_v0 }
  0x59   :  { %233 = vmatpush2.msra.mxu0 %v167_v36  ;;  %967 = vmatpush3.msra.mxu1 %v1383_v5 }
  0x5a   :  { %234 = vmatprep.subr.mxu0 %v1173_v0 }
  0x5b   :  { %235 = vmatpush2.msra.mxu0 %v166_v37 }
  0x5c   :  { %236 = vmatprep.subr.mxu0 %v1173_v0 }
  0x5d   :  { %237 = vmatpush2.msra.mxu0 %v165_v38  ;;  %v469_v38 = vld [vmem:[#allocation7 + $0xf8] sm:$0xff] }
  0x5e   :  { %238 = vmatprep.subr.mxu0 %v1173_v0  ;;  %855 = vmatprep.subr.mxu1 %v469_v38  ;;  %v439_v38 = vld [vmem:[#allocation7 + $0x8] sm:$0xff] }
  0x5f   :  { %239 = vmatpush2.msra.mxu0 %v164_v39  ;;  %v453_v39 = vld [vmem:[#allocation7 + $0x78] sm:$0xff] }
  0x60   :  { %240 = vmatprep.subr.mxu0 %v1173_v0 }
  0x61   :  { %241 = vmatpush2.msra.mxu0 %v163_v40  ;;  %v468_v40 = vld [vmem:[#allocation7 + $0xf0] sm:$0xff] }
  0x62   :  { %242 = vmatprep.subr.mxu0 %v1173_v0 }
  0x63   :  { %243 = vmatpush2.msra.mxu0 %v162_v41  ;;  %v485_v41 = vld [vmem:[#allocation7 + $0x178] sm:$0xff] }
  0x64   :  { %971 = vmatprep.subr.mxu0 %v485_v41 }
  0xa5   :  { %v130_v43 = vpop.permute.xlu0 %129  ;;  %v134_v46 = vpop.permute.xlu1 %133 }
  0xa6   :  { %v142_v45 = vsel %vm141_vm1, %v116_v42, %v130_v43  ;;  %v144_v50 = vsel %vm141_vm1, %v117_v48, %v134_v46  ;;  %v452_v42 = vld [vmem:[#allocation7 + $0x70] sm:$0xff]  ;;  %v467_v43 = vld [vmem:[#allocation7 + $0xe8] sm:$0xff]  ;;  %v466_v46 = vld [vmem:[#allocation7 + $0xe0] sm:$0xff] }
  0xa7   :  { %245 = vmatmul.mubr.f32.vlgmr.msra.gmra.mxu0 %v142_v45  ;;  %v451_v45 = vld [vmem:[#allocation7 + $0x68] sm:$0xff]  ;;  %v450_v48 = vld [vmem:[#allocation7 + $0x60] sm:$0xff] }
  0xa8   :  { %829 = vmatprep.mubr.msk.f32.mxu0 %vm141_vm1, %v127_v44  ;;  %972 = vmatpush3.msra.mxu0 %v485_v41  ;;  %v484_v44 = vld [vmem:[#allocation7 + $0x170] sm:$0xff]  ;;  %v438_v41 = vld [vmem:[#allocation7] sm:$0xff] }
  0xa9   :  { %v132_v47 = vpop.permute.xlu0 %131  ;;  %973 = vmatprep.subr.mxu0 %v484_v44 }
  0xaa   :  { %v143_v49 = vsel %vm141_vm1, %v1264_v16, %v132_v47  ;;  %v136_v51 = vpop.permute.xlu1 %135  ;;  %974 = vmatpush3.msra.mxu0 %v484_v44  ;;  %v483_v47 = vld [vmem:[#allocation7 + $0x168] sm:$0xff] }
  0xab   :  { %250 = vmatmul.mubr.f32.gmra.mxu0 %v143_v49  ;;  %v145_v53 = vsel %vm141_vm1, %v1275_v19, %v136_v51  ;;  %975 = vmatprep.subr.mxu0 %v483_v47  ;;  %v465_v49 = vld [vmem:[#allocation7 + $0xd8] sm:$0xff] }
  0xac   :  { %830 = vmatprep.mubr.msk.f32.mxu0 %vm141_vm1, %v1270_v18  ;;  %976 = vmatpush3.msra.mxu0 %v483_v47  ;;  %v449_v51 = vld [vmem:[#allocation7 + $0x58] sm:$0xff] }
  0xaf   :  { %255 = vmatmul.mubr.f32.gmra.mxu0 %v144_v50  ;;  %v482_v50 = vld [vmem:[#allocation7 + $0x160] sm:$0xff] }
  0xb0   :  { %831 = vmatprep.mubr.msk.f32.mxu0 %vm141_vm1, %v128_v52  ;;  %977 = vmatprep.subr.mxu0 %v482_v50  ;;  %v464_v52 = vld [vmem:[#allocation7 + $0xd0] sm:$0xff] }
  0xb1   :  { %978 = vmatpush3.msra.mxu0 %v482_v50  ;;  %v1176_v50 = vmov 1966171168  }
  0xb3   :  { %260 = vmatmul.mubr.f32.gmra.mxu0 %v145_v53  ;;  %v481_v53 = vld [vmem:[#allocation7 + $0x158] sm:$0xff] }
  0xb4   :  { %979 = vmatprep.subr.mxu0 %v481_v53 }
  0xb5   :  { %980 = vmatpush3.msra.mxu0 %v481_v53 }
 0x167   :  { %v1388_v6 = vpop.f32.mrf.mxu0 }
 0x168   :  { %v274_v12 = vmul.f32 %v1388_v6, %v1388_v6 }
 0x169   :  { %v248_v7 = vpop.f32.mrf.mxu0 }
 0x16a   :  { %v448_v7 = vld [vmem:[#allocation7 + $0x50] sm:$0xff] }
 0x16b   :  { %v1390_v8 = vpop.f32.mrf.mxu0 }
 0x16c   :  { %v275_v10 = vmul.f32 %v1390_v8, %v1390_v8  ;;  %v265_v13 = vadd.f32 %v1390_v8, %v1388_v6 }
 0x16d   :  { %v253_v9 = vpop.f32.mrf.mxu0 }
 0x16e   :  { %v278_v16 = vadd.f32 %v275_v10, %v274_v12  ;;  %v463_v9 = vld [vmem:[#allocation7 + $0xc8] sm:$0xff]  ;;  %v480_v10 = vld [vmem:[#allocation7 + $0x150] sm:$0xff] }
 0x16f   :  { %v1394_v11 = vpop.f32.mrf.mxu0  ;;  %981 = vmatprep.subr.mxu0 %v480_v10  ;;  %v447_v12 = vld [vmem:[#allocation7 + $0x48] sm:$0xff] }
 0x170   :  { %v276_v14 = vmul.f32 %v1394_v11, %v1394_v11  ;;  %v266_v17 = vadd.f32 %v265_v13, %v1394_v11  ;;  %982 = vmatpush3.msra.mxu0 %v480_v10  ;;  %v462_v13 = vld [vmem:[#allocation7 + $0xc0] sm:$0xff] }
 0x171   :  { %v258_v15 = vpop.f32.mrf.mxu0 }
 0x172   :  { %v279_v19 = vadd.f32 %v278_v16, %v276_v14  ;;  %v479_v14 = vld [vmem:[#allocation7 + $0x148] sm:$0xff]  ;;  %v446_v15 = vld [vmem:[#allocation7 + $0x40] sm:$0xff]  ;;  %v461_v16 = vld [vmem:[#allocation7 + $0xb8] sm:$0xff] }
 0x173   :  { %v1403_v18 = vpop.f32.mrf.mxu0  ;;  %983 = vmatprep.subr.mxu0 %v479_v14 }
 0x174   :  { %v267_v20 = vadd.f32 %v266_v17, %v1403_v18  ;;  %v277_v21 = vmul.f32 %v1403_v18, %v1403_v18  ;;  %984 = vmatpush3.msra.mxu0 %v479_v14  ;;  %v478_v17 = vld [vmem:[#allocation7 + $0x140] sm:$0xff] }
 0x175   :  { %v263_v22 = vpop.f32.mrf.mxu0  ;;  %985 = vmatprep.subr.mxu0 %v478_v17  ;;  %v1416_v14 = vld [vmem:[%s1515_s4] sm:$0x1]  ;;  %s1177_s4 = smov [#allocation10]  }
 0x176   :  { %v268_v24 = vrot.slane %v267_v20, 4  ;;  %v280_v25 = vadd.f32 %v279_v19, %v277_v21  ;;  %v445_v19 = vld [vmem:[#allocation7 + $0x38] sm:$0xff]  ;;  %986 = vmatpush3.msra.mxu0 %v478_v17  ;;  %v444_v22 = vld [vmem:[#allocation7 + $0x30] sm:$0xff] }
 0x177   :  { %v477_v21 = vld [vmem:[#allocation7 + $0x138] sm:$0xff] }
 0x178   :  { %v269_v26 = vadd.f32 %v268_v24, %v267_v20  ;;  %v281_v27 = vrot.slane %v280_v25, 4  ;;  %v460_v20 = vld [vmem:[#allocation7 + $0xb0] sm:$0xff]  ;;  %987 = vmatprep.subr.mxu0 %v477_v21  ;;  %v459_v24 = vld [vmem:[#allocation7 + $0xa8] sm:$0xff] }
 0x179   :  { %988 = vmatpush3.msra.mxu0 %v477_v21 }
 0x17a   :  { %v270_v28 = vrot.slane %v269_v26, 2  ;;  %v282_v29 = vadd.f32 %v281_v27, %v280_v25  ;;  %v476_v25 = vld [vmem:[#allocation7 + $0x130] sm:$0xff]  ;;  %v458_v27 = vld [vmem:[#allocation7 + $0xa0] sm:$0xff] }
 0x17b   :  { %989 = vmatprep.subr.mxu0 %v476_v25 }
 0x17c   :  { %v271_v30 = vadd.f32 %v270_v28, %v269_v26  ;;  %v283_v31 = vrot.slane %v282_v29, 2  ;;  %v443_v26 = vld [vmem:[#allocation7 + $0x28] sm:$0xff]  ;;  %990 = vmatpush3.msra.mxu0 %v476_v25 }
 0x17d   :  { %v475_v28 = vld [vmem:[#allocation7 + $0x128] sm:$0xff] }
 0x17e   :  { %v272_v32 = vrot.slane %v271_v30, 1  ;;  %v284_v33 = vadd.f32 %v283_v31, %v282_v29  ;;  %991 = vmatprep.subr.mxu0 %v475_v28  ;;  %v442_v29 = vld [vmem:[#allocation7 + $0x20] sm:$0xff] }
 0x17f   :  { %992 = vmatpush3.msra.mxu0 %v475_v28  ;;  %v474_v31 = vld [vmem:[#allocation7 + $0x120] sm:$0xff] }
 0x180   :  { %v285_v34 = vrot.slane %v284_v33, 1  ;;  %v273_v35 = vadd.f32 %v272_v32, %v271_v30  ;;  %v457_v30 = vld [vmem:[#allocation7 + $0x98] sm:$0xff]  ;;  %993 = vmatprep.subr.mxu0 %v474_v31 }
 0x181   :  { %v441_v32 = vld [vmem:[#allocation7 + $0x18] sm:$0xff]  ;;  %994 = vmatpush3.msra.mxu0 %v474_v31 }
 0x182   :  { %v286_v36 = vadd.f32 %v285_v34, %v284_v33  ;;  %v456_v33 = vld [vmem:[#allocation7 + $0x90] sm:$0xff]  ;;  %v473_v34 = vld [vmem:[#allocation7 + $0x118] sm:$0xff] }
 0x183   :  { %995 = vmatprep.subr.mxu0 %v473_v34 }
 0x184   :  { %v287_v37 = vsel %vm105_vm2, %v273_v35, %v286_v36  ;;  %v440_v35 = vld [vmem:[#allocation7 + $0x10] sm:$0xff]  ;;  %v455_v36 = vld [vmem:[#allocation7 + $0x88] sm:$0xff]  ;;  %996 = vmatpush3.msra.mxu0 %v473_v34 }
 0x185   :  { %969 = vmatmul.mubr.f32.vlgmr.msra.gmra.mxu1 %v287_v37  ;;  %v472_v37 = vld [vmem:[#allocation7 + $0x110] sm:$0xff] }
 0x186   :  { %856 = vmatpush3.msra.mxu1 %v453_v39  ;;  %v454_v39 = vld [vmem:[#allocation7 + $0x80] sm:$0xff]  ;;  %997 = vmatprep.subr.mxu0 %v472_v37 }
 0x187   :  { %857 = vmatprep.subr.mxu1 %v468_v40  ;;  %998 = vmatpush3.msra.mxu0 %v472_v37  ;;  %v471_v40 = vld [vmem:[#allocation7 + $0x108] sm:$0xff] }
 0x188   :  { %858 = vmatpush3.msra.mxu1 %v452_v42  ;;  %999 = vmatprep.subr.mxu0 %v471_v40  ;;  %v470_v42 = vld [vmem:[#allocation7 + $0x100] sm:$0xff] }
 0x189   :  { %859 = vmatprep.subr.mxu1 %v467_v43  ;;  %1000 = vmatpush3.msra.mxu0 %v471_v40 }
 0x18a   :  { %860 = vmatpush3.msra.mxu1 %v451_v45  ;;  %1001 = vmatprep.subr.mxu0 %v470_v42 }
 0x18b   :  { %861 = vmatprep.subr.mxu1 %v466_v46  ;;  %1002 = vmatpush3.msra.mxu0 %v470_v42 }
 0x18c   :  { %862 = vmatpush3.msra.mxu1 %v450_v48 }
 0x18d   :  { %863 = vmatprep.subr.mxu1 %v465_v49 }
 0x18e   :  { %864 = vmatpush3.msra.mxu1 %v449_v51  ;;  %v368_v51 = vunpack.c.l.s4 %v1176_v50 }
 0x18f   :  { %865 = vmatprep.subr.mxu1 %v464_v52  ;;  %v370_v52 = vlaneseq }
 0x190   :  { %866 = vmatpush3.msra.mxu1 %v448_v7  ;;  %v369_v53 = vunpack.c.0.s8 %v368_v51 }
 0x191   :  { %867 = vmatprep.subr.mxu1 %v463_v9  ;;  %v371_v7 = vshrl.u32 %v370_v52, 7 }
 0x192   :  { %868 = vmatpush3.msra.mxu1 %v447_v12 }
 0x193   :  { %869 = vmatprep.subr.mxu1 %v462_v13  ;;  %v1410_v9 = vsub.s32 %v369_v53, %v371_v7 }
 0x194   :  { %870 = vmatpush3.msra.mxu1 %v446_v15 }
 0x195   :  { %871 = vmatprep.subr.mxu1 %v461_v16  ;;  %v1419_v16 = vsub.s32 0, %v371_v7 }
 0x196   :  { %872 = vmatpush3.msra.mxu1 %v445_v19  ;;  %v1425_v19 = vld [vmem:[%s1516_s5] sm:$0x1]  ;;  %s814_s5 = sshll.u32 %s1177_s4, 4  ;;  %s815_s5 = int_to_ptr.vmem [resolvable:$true] %s814_s5 }
 0x197   :  { %873 = vmatprep.subr.mxu1 %v460_v20  ;;  %s1139_s20 = scalar_lea.vmem %s815_s5, 512  ;;  %p1144_p7 = scmp.lt.s32.totalorder %s815_s5, %s815_s5 }
 0x198   :  { %874 = vmatpush3.msra.mxu1 %v444_v22  ;;  %p1140_p6 = scmp.ne.s32.totalorder %s815_s5, %s1139_s20  ;;  %p1145_p8 = scmp.lt.s32.totalorder %s1139_s20, %s1139_s20 }
 0x199   :  { %875 = vmatprep.subr.mxu1 %v459_v24 }
 0x19a   :  { %876 = vmatpush3.msra.mxu1 %v443_v26  ;;  %p1146_p9 = por %p1145_p8, %p1144_p7 }
 0x19b   :  { %877 = vmatprep.subr.mxu1 %v458_v27 }
 0x19c   :  { %878 = vmatpush3.msra.mxu1 %v442_v29  ;;  %p1147_p10 = pnand %p1146_p9, %p1140_p6 }
 0x19d   :  { %879 = vmatprep.subr.mxu1 %v457_v30 }
 0x19e   :  { %880 = vmatpush3.msra.mxu1 %v441_v32 }
 0x19f   :  { %881 = vmatprep.subr.mxu1 %v456_v33 }
 0x1a0   :  { %882 = vmatpush3.msra.mxu1 %v440_v35 }
 0x1a1   :  { %883 = vmatprep.subr.mxu1 %v455_v36 }
 0x1a2   :  { %884 = vmatpush3.msra.mxu1 %v439_v38 }
 0x1a3   :  { %885 = vmatprep.subr.mxu1 %v454_v39 }
 0x1a4   :  { %886 = vmatpush3.msra.mxu1 %v438_v41 }
 0x1a5   :  { %1009 = vmatprep.subr.mxu1 %v1173_v0 }
 0x245   :  { %v354_v43 = vpop.f32.mrf.mxu1 }
 0x246   :  { %v358_v44 = vmul.f32 0.001953125, %v354_v43 }
 0x247   :  { %v970_v45 = vpop.f32.mrf.mxu1 }
 0x248   :  { %v359_v46 = vmul.f32 %v358_v44, %v358_v44 }
 0x24a   :  { %v361_v47 = vrot.slane %v359_v46, 7 }
 0x24c   :  { %v363_v48 = vsub.f32 %v358_v44, %v361_v47 }
 0x24e   :  { %v364_v49 = vadd.f32 1e-05, %v363_v48 }
 0x250   :  { %1055 = vrsqrt.f32 %v364_v49 }
 0x25d   :  { %v1056_v10 = vpop.eup %1055 }
 0x25e   :  { %v373_v12 = vrot.slane %v1056_v10, %v1410_v9 }
 0x260   :  { %v374_v13 = vcombine.high %v373_v12, %v373_v12 }
 0x262   :  { %v381_v15 = vrot.slane %v374_v13, %v1410_v9 }
 0x264   :  { %v383_v17 = vmul.f32 %v381_v15, %v1416_v14 }
 0x266   :  { %v384_v20 = vmul.f32 %v383_v17, %v358_v44  ;;  %v390_v21 = vrot.slane %v383_v17, %v1419_v16 }
 0x268   :  { %v385_v22 = vsub.f32 %v1425_v19, %v384_v20  ;;  %v392_v24 = vmul.f32 %v390_v21, %v1388_v6  ;;  %v393_v26 = vmul.f32 %v390_v21, %v1390_v8  ;;  %v394_v27 = vmul.f32 %v390_v21, %v1394_v11 }
 0x269   :  { %v395_v28 = vmul.f32 %v390_v21, %v1403_v18 }
 0x26a   :  { %v400_v25 = vrot.slane %v385_v22, %v1419_v16 }
 0x26c   :  { %v1434_v29 = vadd.f32 %v400_v25, %v392_v24  ;;  %v1436_v30 = vadd.f32 %v400_v25, %v393_v26  ;;  %v1438_v31 = vadd.f32 %v400_v25, %v394_v27  ;;  %v1440_v32 = vadd.f32 %v400_v25, %v395_v28 }
 0x26e   :  { %v406_v33 = vmax.f32 %v1434_v29, 0.0  ;;  %v407_v6 = vmax.f32 %v1436_v30, 0.0  ;;  %v408_v34 = vmax.f32 %v1438_v31, 0.0  ;;  %v409_v8 = vmax.f32 %v1440_v32, 0.0 }
 0x270   :  { %v414_v18 = vrot.slane %v406_v33, 7  ;;  %550 = vmatprep.mubr.f32.mxu1 %v406_v33  ;;  %v426_v35 = vrot.slane %v406_v33, 1  ;;  %v427_v36 = vrot.slane %v407_v6, 1  ;;  %v429_v37 = vrot.slane %v408_v34, 1 }
 0x271   :  { %v430_v38 = vrot.slane %v409_v8, 1  ;;  %v415_v39 = vrot.slane %v407_v6, 7  ;;  %v417_v43 = vrot.slane %v408_v34, 7  ;;  %v418_v44 = vrot.slane %v409_v8, 7 }
 0x272   :  { %833 = vmatmul.mubr.msk.f32.vlgmr.msra.gmra.mxu1 %vm1447_vm4, %v414_v18  ;;  %v428_v40 = vsel %vm118_vm0, %v426_v35, %v427_v36 }
 0x273   :  { %555 = vmatprep.mubr.f32.mxu1 %v407_v6  ;;  %1003 = vmatprep.mubr.f32.mxu0 %v428_v40  ;;  %v431_v41 = vsel %vm118_vm0, %v429_v37, %v430_v38  ;;  %v416_v42 = vsel %vm105_vm2, %v414_v18, %v415_v39 }
 0x274   :  { %1004 = vmatmul.mubr.msk.f32.vlgmr.msra.gmra.mxu0 %vm118_vm0, %v427_v36  ;;  %1010 = vmatpush3.msra.mxu1 %v1282_v23  ;;  %v419_v23 = vsel %vm105_vm2, %v417_v43, %v418_v44 }
 0x275   :  { %1006 = vmatprep.mubr.f32.mxu0 %v431_v41  ;;  %1011 = vmatprep.subr.mxu1 %v1173_v0 }
 0x276   :  { %556 = vmatmul.mubr.f32.gmra.mxu1 %v416_v42 }
 0x277   :  { %560 = vmatprep.mubr.f32.mxu1 %v408_v34  ;;  %1012 = vmatpush3.msra.mxu1 %v1327_v54 }
 0x278   :  { %1007 = vmatmul.mubr.msk.f32.gmra.mxu0 %vm118_vm0, %v430_v38  ;;  %1013 = vmatprep.subr.mxu1 %v1173_v0 }
 0x279   :  { %1014 = vmatpush3.msra.mxu1 %v1331_v55 }
 0x27a   :  { %835 = vmatmul.mubr.msk.f32.gmra.mxu1 %vm1447_vm4, %v417_v43  ;;  %1015 = vmatprep.subr.mxu1 %v1173_v0 }
 0x27b   :  { %565 = vmatprep.mubr.f32.mxu1 %v409_v8  ;;  %1016 = vmatpush3.msra.mxu1 %v1335_v56 }
 0x27c   :  { %1017 = vmatprep.subr.mxu1 %v1173_v0 }
 0x27d   :  { %1018 = vmatpush3.msra.mxu1 %v1339_v57 }
 0x27e   :  { %566 = vmatmul.mubr.f32.gmra.mxu1 %v419_v23  ;;  %1019 = vmatprep.subr.mxu1 %v1173_v0 }
 0x27f   :  { %1020 = vmatpush3.msra.mxu1 %v1343_v58  ;;  %1041 = vmatprep.mubr.msk.f32.mxu1 %vm1175_vm3, %v1173_v0 }
 0x280   :  { %1021 = vmatprep.subr.mxu1 %v1173_v0 }
 0x281   :  { %1022 = vmatpush3.msra.mxu1 %v1347_v59 }
 0x282   :  { %1023 = vmatprep.subr.mxu1 %v1173_v0 }
 0x283   :  { %1024 = vmatpush3.msra.mxu1 %v1351_v60 }
 0x284   :  { %1025 = vmatprep.subr.mxu1 %v1173_v0 }
 0x285   :  { %1026 = vmatpush3.msra.mxu1 %v1355_v61 }
 0x286   :  { %1027 = vmatprep.subr.mxu1 %v1173_v0 }
 0x287   :  { %1028 = vmatpush3.msra.mxu1 %v1359_v62 }
 0x288   :  { %1029 = vmatprep.subr.mxu1 %v1173_v0 }
 0x289   :  { %1030 = vmatpush3.msra.mxu1 %v1363_v63 }
 0x28a   :  { %1031 = vmatprep.subr.mxu1 %v1173_v0 }
 0x28b   :  { %1032 = vmatpush3.msra.mxu1 %v1367_v1 }
 0x28c   :  { %1033 = vmatprep.subr.mxu1 %v1173_v0 }
 0x28d   :  { %1034 = vmatpush3.msra.mxu1 %v1370_v2 }
 0x28e   :  { %1035 = vmatprep.subr.mxu1 %v1173_v0 }
 0x28f   :  { %1036 = vmatpush3.msra.mxu1 %v1373_v3 }
 0x290   :  { %1037 = vmatprep.subr.mxu1 %v1173_v0 }
 0x291   :  { %1038 = vmatpush3.msra.mxu1 %v1379_v4 }
 0x292   :  { %1039 = vmatprep.subr.mxu1 %v1173_v0 }
 0x293   :  { %1040 = vmatpush3.msra.mxu1 %v1383_v5 }
 0x332   :  { %v887_v54 = vpop.f32.mrf.mxu1 }
 0x334   :  { %v888_v55 = vpop.f32.mrf.mxu1  ;;  %v1005_v56 = vpop.f32.mrf.mxu0 }
 0x335   :  { %v889_v60 = vadd.f32 %v888_v55, %v887_v54 }
 0x336   :  { %v890_v57 = vpop.f32.mrf.mxu1  ;;  %v637_v58 = vpop.f32.mrf.mxu0 }
 0x337   :  { %v638_v3 = vadd.f32 %v889_v60, %v637_v58 }
 0x338   :  { %v891_v59 = vpop.f32.mrf.mxu1  ;;  %v1008_v62 = vpop.f32.mrf.mxu0 }
 0x339   :  { %v892_v61 = vadd.f32 %v891_v59, %v890_v57  ;;  %v665_v5 = vmul.f32 %v638_v3, %v638_v3 }
 0x33a   :  { %v893_v63 = vpop.f32.mrf.mxu1  ;;  %v647_v46 = vpop.f32.mrf.mxu0 }
 0x33b   :  { %v643_v1 = vadd.f32 %v1005_v56, %v892_v61 }
 0x33c   :  { %v894_v2 = vpop.f32.mrf.mxu1 }
 0x33d   :  { %v895_v45 = vadd.f32 %v894_v2, %v893_v63  ;;  %v666_v47 = vmul.f32 %v643_v1, %v643_v1  ;;  %v656_v49 = vadd.f32 %v643_v1, %v638_v3 }
 0x33e   :  { %v896_v4 = vpop.f32.mrf.mxu1 }
 0x33f   :  { %v648_v0 = vadd.f32 %v895_v45, %v647_v46  ;;  %v669_v52 = vadd.f32 %v666_v47, %v665_v5 }
 0x340   :  { %v897_v48 = vpop.f32.mrf.mxu1 }
 0x341   :  { %v667_v50 = vmul.f32 %v648_v0, %v648_v0  ;;  %v898_v51 = vadd.f32 %v897_v48, %v896_v4  ;;  %v657_v53 = vadd.f32 %v656_v49, %v648_v0 }
 0x343   :  { %v653_v7 = vadd.f32 %v1008_v62, %v898_v51  ;;  %v670_v10 = vadd.f32 %v669_v52, %v667_v50 }
 0x345   :  { %v658_v12 = vadd.f32 %v657_v53, %v653_v7  ;;  %v668_v13 = vmul.f32 %v653_v7, %v653_v7 }
 0x347   :  { %v659_v15 = vrot.slane %v658_v12, 4  ;;  %v671_v17 = vadd.f32 %v670_v10, %v668_v13 }
 0x349   :  { %v660_v20 = vadd.f32 %v659_v15, %v658_v12  ;;  %v672_v21 = vrot.slane %v671_v17, 4 }
 0x34b   :  { %v661_v22 = vrot.slane %v660_v20, 2  ;;  %v673_v24 = vadd.f32 %v672_v21, %v671_v17 }
 0x34d   :  { %v662_v25 = vadd.f32 %v661_v22, %v660_v20  ;;  %v674_v26 = vrot.slane %v673_v24, 2 }
 0x34f   :  { %v663_v27 = vrot.slane %v662_v25, 1  ;;  %v675_v28 = vadd.f32 %v674_v26, %v673_v24 }
 0x351   :  { %v676_v33 = vrot.slane %v675_v28, 1  ;;  %v664_v6 = vadd.f32 %v663_v27, %v662_v25 }
 0x353   :  { %v677_v34 = vadd.f32 %v676_v33, %v675_v28 }
 0x355   :  { %v678_v8 = vsel %vm105_vm2, %v664_v6, %v677_v34 }
 0x356   :  { %1042 = vmatmul.mubr.f32.vlgmr.msra.gmra.mxu1 %v678_v8 }
 0x416   :  { %v745_v11 = vpop.f32.mrf.mxu1 }
 0x417   :  { %v749_v18 = vmul.f32 0.001953125, %v745_v11 }
 0x418   :  { %v1043_v35 = vpop.f32.mrf.mxu1 }
 0x419   :  { %v750_v36 = vmul.f32 %v749_v18, %v749_v18 }
 0x41b   :  { %v752_v37 = vrot.slane %v750_v36, 7 }
 0x41d   :  { %v754_v38 = vsub.f32 %v749_v18, %v752_v37 }
 0x41f   :  { %v755_v39 = vadd.f32 1e-05, %v754_v38 }
 0x421   :  { %1057 = vrsqrt.f32 %v755_v39 }
 0x42e   :  { %v1058_v40 = vpop.eup %1057 }
 0x42f   :  { %v764_v41 = vrot.slane %v1058_v40, %v1410_v9 }
 0x431   :  { %v765_v42 = vcombine.high %v764_v41, %v764_v41 }
 0x433   :  { %v772_v43 = vrot.slane %v765_v42, %v1410_v9 }
 0x435   :  { %v774_v44 = vmul.f32 %v772_v43, %v1416_v14 }
 0x437   :  { %v775_v23 = vmul.f32 %v774_v44, %v749_v18  ;;  %v781_v54 = vrot.slane %v774_v44, %v1419_v16 }
 0x439   :  { %v776_v55 = vsub.f32 %v1425_v19, %v775_v23  ;;  %v783_v56 = vmul.f32 %v781_v54, %v638_v3  ;;  %v784_v58 = vmul.f32 %v781_v54, %v643_v1  ;;  %v785_v59 = vmul.f32 %v781_v54, %v648_v0 }
 0x43a   :  { %v786_v60 = vmul.f32 %v781_v54, %v653_v7 }
 0x43b   :  { %v791_v57 = vrot.slane %v776_v55, %v1419_v16 }
 0x43d   :  { %v793_v61 = vadd.f32 %v791_v57, %v783_v56  ;;  %v794_v62 = vadd.f32 %v791_v57, %v784_v58  ;;  %v795_v63 = vadd.f32 %v791_v57, %v785_v59  ;;  %v796_v2 = vadd.f32 %v791_v57, %v786_v60 }
 0x43f   :  { %v797_v9 = vadd.f32 %v793_v61, %v1434_v29  ;;  %v798_v14 = vadd.f32 %v794_v62, %v1436_v30  ;;  %v799_v45 = vadd.f32 %v795_v63, %v1438_v31  ;;  %v800_v19 = vadd.f32 %v796_v2, %v1440_v32 }
 0x441   :  { %v801_v3 = vmax.f32 %v797_v9, 0.0  ;;  %v802_v46 = vmax.f32 %v798_v14, 0.0  ;;  %v803_v16 = vmax.f32 %v799_v45, 0.0  ;;  %v804_v1 = vmax.f32 %v800_v19, 0.0 }
 0x443   :  { %805 = vst [vmem:[#allocation10] sm:$0xff] %v801_v3  ;;  %806 = vst [vmem:[#allocation10 + $0x8] sm:$0xff] %v802_v46 }
 0x444   :  { %807 = vst [vmem:[#allocation10 + $0x10] sm:$0xff] %v803_v16  ;;  %808 = vst [vmem:[#allocation10 + $0x18] sm:$0xff] %v804_v1 }
 0x445   :  { %1150 = shalt.err (!%p1147_p10)
}
 0x446   :  { %820 = dma.vmem_to_hbm [thread:$0]  %s815_s5, 512, %s1517_s6, [#allocation4], %s1169_s26, %s1169_s26, %s1170_s27  }
 0x447   :  { %1165 = dma.done.wait [#allocation4], 512  }
 0x448   :  { %1166 = vsyncadd [#allocation4], 4294966784 }
 0x449   :  { %824 = vsyncpa [#allocation3], 1 }
 0x44a   :  { %825 = vsyncpa [#allocation6], 1 }
 0x44b   :  { %826 = vsyncpa [#allocation9], 1 }
 0x44c   :  { %827 = vsyncpa [#allocation4], 1 }

</bundles_post_ra>
